<compile_context>
chip_gen: v7x
topology: tpu7x:2x2x1
jax: 0.10.0
libtpu: 0.0.40
codegen_flags: <defaults>
</compile_context>

<pallas_src>
import functools

import jax
import jax.numpy as jnp
from jax import lax
from jax.experimental import pallas as pl
from jax.experimental.pallas import tpu as pltpu


def _edr_kernel(x_ref, h0_ref, out_ref, carry_ref, ema_ref,
                *, a, one_minus_a, tile_t, feat, unroll):
    # x_ref:     VMEM (1, TILE_T, F)   input time tile of batch b
    # h0_ref:    VMEM (1, 1, F)        initial hidden state of batch b
    # out_ref:   VMEM (1, TILE_T, 2F)  pos | neg rectified log-ratio
    # carry_ref: VMEM (1, F)           EMA carry, persists across time blocks
    # ema_ref:   VMEM (TILE_T, F)      per-tile EMA values
    nt = pl.program_id(1)

    @pl.when(nt == 0)
    def _():
        carry_ref[...] = h0_ref[0]                    # (1, F)

    # --- serial part: EMA recurrence only ------------------------------------
    def body(i, h):
        xt = x_ref[0, pl.ds(i, 1), :]                 # (1, F)
        h = a * xt + one_minus_a * h
        ema_ref[pl.ds(i, 1), :] = h
        return h

    h = lax.fori_loop(0, tile_t, body, carry_ref[...], unroll=unroll)
    carry_ref[...] = h                                # carry to next time block

    # --- vectorized epilogue over the full tile -------------------------------
    x = x_ref[0]                                      # (TILE_T, F)
    ema = ema_ref[...]                                # (TILE_T, F)
    y = (jnp.log(x) - jnp.log(ema)) * 20.0            # == log(x/ema) * 20
    out_ref[0, :, :feat] = jnp.maximum(y - 0.01, 0.0)       # pos branch
    out_ref[0, :, feat:] = jnp.maximum(-y - 0.01, 0.0)      # neg branch


def _pick_tile_t(T, max_tile=512):
    """Largest divisor of T that is <= max_tile and a multiple of 8 (or T itself)."""
    for cand in range(min(max_tile, T), 0, -1):
        if T % cand == 0 and (cand % 8 == 0 or cand == T):
            return cand
    return T


def edr_forward(x, hidden, alpha=0.3, tile_t=None):
    """x: (B, T, F) f32, hidden: (B, 1, F) f32 -> (B, T, 2, F) f32."""
    B, T, F = x.shape
    if tile_t is None:
        tile_t = _pick_tile_t(T)
    assert T % tile_t == 0, "tile_t must divide T"
    n_t_blocks = T // tile_t

    a = float(abs(alpha))
    one_minus_a = 1.0 - a

    if tile_t % 8 == 0:
        unroll = 8
    elif tile_t <= 64:
        unroll = tile_t
    else:
        unroll = 1

    kernel = functools.partial(
        _edr_kernel, a=a, one_minus_a=one_minus_a,
        tile_t=tile_t, feat=F, unroll=unroll)

    out = pl.pallas_call(
        kernel,
        out_shape=jax.ShapeDtypeStruct((B, T, 2 * F), jnp.float32),
        grid=(B, n_t_blocks),
        in_specs=[
            pl.BlockSpec((1, tile_t, F), lambda b, nt: (b, nt, 0)),   # x tile
            pl.BlockSpec((1, 1, F), lambda b, nt: (b, 0, 0)),         # hidden
        ],
        out_specs=pl.BlockSpec((1, tile_t, 2 * F), lambda b, nt: (b, nt, 0)),
        scratch_shapes=[
            pltpu.VMEM((1, F), jnp.float32),        # EMA carry across time blocks
            pltpu.VMEM((tile_t, F), jnp.float32),   # per-tile EMA values
        ],
        compiler_params=pltpu.CompilerParams(
            dimension_semantics=("parallel", "arbitrary")),  # batch || , time sequential
    )(x, hidden)

    return out.reshape(B, T, 2, F)                   # free reshape (contiguous)


def edr_reference(x, hidden, alpha=0.3):
    """Pure-JAX reference matching the PyTorch module."""
    a = jnp.abs(jnp.float32(alpha))
    h0 = hidden[:, 0, :]

    def step(h, xt):
        h = a * xt + (1.0 - a) * h
        return h, h

    _, ema = jax.lax.scan(step, h0, jnp.transpose(x, (1, 0, 2)))
    ema = jnp.transpose(ema, (1, 0, 2))
    y = jnp.log(x / ema) * 20.0
    pos = jax.nn.relu(y - 0.01)[:, :, None, :]
    neg = jax.nn.relu(-y - 0.01)[:, :, None, :]
    return jnp.concatenate([pos, neg], axis=2)


if __name__ == "__main__":
    B, T, F = 2, 32, 128
    key = jax.random.PRNGKey(0)
    kx, kh = jax.random.split(key)
    # Positive inputs so log(x / ema) is well-defined (as in typical EDR usage).
    x = jax.random.uniform(kx, (B, T, F), dtype=jnp.float32, minval=0.5, maxval=1.5)
    hidden = jax.random.uniform(kh, (B, 1, F), dtype=jnp.float32, minval=0.5, maxval=1.5)

    # Force several time blocks (tile_t=8 -> 4 blocks) to exercise the EMA
    # carry across grid steps; production use picks tile_t automatically.
    out = edr_forward(x, hidden, alpha=0.3, tile_t=8)
    out = jax.block_until_ready(out)

    ref = edr_reference(x, hidden, alpha=0.3)
    assert out.shape == (B, T, 2, F), out.shape
    assert jnp.allclose(out, ref, atol=1e-5, rtol=1e-5), "mismatch vs reference"

    # Also check the auto-tiled path (single full-T block here).
    out2 = jax.block_until_ready(edr_forward(x, hidden, alpha=0.3))
    assert jnp.allclose(out2, ref, atol=1e-5, rtol=1e-5), "mismatch vs reference (auto tile)"

    print("KERNEL_OK")
</pallas_src>

<mosaic_0001>
module attributes {stable_mosaic.version = 11 : i64} {
  func.func @_edr_kernel(%arg0: i32, %arg1: i32, %arg2: memref<1x8x128xf32, #tpu.memory_space<vmem>>, %arg3: memref<1x1x128xf32, #tpu.memory_space<vmem>>, %arg4: memref<1x8x256xf32, #tpu.memory_space<vmem>>, %arg5: memref<1x128xf32, #tpu.memory_space<vmem>>, %arg6: memref<8x128xf32, #tpu.memory_space<vmem>>) attributes {dimension_semantics = [#tpu.dimension_semantics<parallel>, #tpu.dimension_semantics<arbitrary>], iteration_bounds = array<i64: 2, 4>, scalar_prefetch = 0 : i64, scratch_operands = 2 : i64, tpu.core_type = #tpu.core_type<tc>, window_params = [{transform_indices = @transform_0, window_bounds = array<i64: 1, 8, 128>}, {transform_indices = @transform_1, window_bounds = array<i64: 1, 1, 128>}, {transform_indices = @transform_2, window_bounds = array<i64: 1, 8, 256>}]} {
    %c0_i32 = arith.constant 0 : i32
    %0 = arith.cmpi eq, %arg1, %c0_i32 : i32
    %1 = arith.extui %0 : i1 to i32
    %c0_i32_0 = arith.constant 0 : i32
    %2 = arith.cmpi ne, %1, %c0_i32_0 : i32
    scf.if %2 {
      %c0_60 = arith.constant 0 : index
      %c0_61 = arith.constant 0 : index
      %c0_62 = arith.constant 0 : index
      %109 = vector.load %arg3[%c0_60, %c0_61, %c0_62] : memref<1x1x128xf32, #tpu.memory_space<vmem>>, vector<1x1x128xf32>
      %110 = vector.shape_cast %109 : vector<1x1x128xf32> to vector<1x128xf32>
      %c0_63 = arith.constant 0 : index
      %c0_64 = arith.constant 0 : index
      %111 = vector.load %arg5[%c0_63, %c0_64] : memref<1x128xf32, #tpu.memory_space<vmem>>, vector<1x128xf32>
      tpu.vector_store %arg5[%c0_63, %c0_64], %110 {strides = array<i32>} : memref<1x128xf32, #tpu.memory_space<vmem>>, vector<1x128xf32>,
    } else {
    }
    %c0 = arith.constant 0 : index
    %c0_1 = arith.constant 0 : index
    %3 = vector.load %arg5[%c0, %c0_1] : memref<1x128xf32, #tpu.memory_space<vmem>>, vector<1x128xf32>
    %c0_i32_2 = arith.constant 0 : i32
    %c0_3 = arith.constant 0 : index
    %4 = arith.index_cast %c0_i32_2 : i32 to index
    %c0_4 = arith.constant 0 : index
    %5 = vector.load %arg2[%c0_3, %4, %c0_4] : memref<1x8x128xf32, #tpu.memory_space<vmem>>, vector<1x1x128xf32>
    %6 = vector.shape_cast %5 : vector<1x1x128xf32> to vector<1x128xf32>
    %cst = arith.constant 3.000000e-01 : f32
    %7 = vector.broadcast %cst : f32 to vector<1x128xf32>
    %8 = arith.mulf %7, %6 : vector<1x128xf32>
    %cst_5 = arith.constant 0.699999988 : f32
    %9 = vector.broadcast %cst_5 : f32 to vector<1x128xf32>
    %10 = arith.mulf %9, %3 : vector<1x128xf32>
    %11 = arith.addf %8, %10 : vector<1x128xf32>
    %12 = arith.index_cast %c0_i32_2 : i32 to index
    %c0_6 = arith.constant 0 : index
    %13 = vector.load %arg6[%12, %c0_6] : memref<8x128xf32, #tpu.memory_space<vmem>>, vector<1x128xf32>
    tpu.vector_store %arg6[%12, %c0_6], %11 {strides = array<i32>} : memref<8x128xf32, #tpu.memory_space<vmem>>, vector<1x128xf32>,
    %c1_i32 = arith.constant 1 : i32
    %c0_7 = arith.constant 0 : index
    %14 = arith.index_cast %c1_i32 : i32 to index
    %c0_8 = arith.constant 0 : index
    %15 = vector.load %arg2[%c0_7, %14, %c0_8] : memref<1x8x128xf32, #tpu.memory_space<vmem>>, vector<1x1x128xf32>
    %16 = vector.shape_cast %15 : vector<1x1x128xf32> to vector<1x128xf32>
    %cst_9 = arith.constant 3.000000e-01 : f32
    %17 = vector.broadcast %cst_9 : f32 to vector<1x128xf32>
    %18 = arith.mulf %17, %16 : vector<1x128xf32>
    %cst_10 = arith.constant 0.699999988 : f32
    %19 = vector.broadcast %cst_10 : f32 to vector<1x128xf32>
    %20 = arith.mulf %19, %11 : vector<1x128xf32>
    %21 = arith.addf %18, %20 : vector<1x128xf32>
    %22 = arith.index_cast %c1_i32 : i32 to index
    %c0_11 = arith.constant 0 : index
    %23 = vector.load %arg6[%22, %c0_11] : memref<8x128xf32, #tpu.memory_space<vmem>>, vector<1x128xf32>
    tpu.vector_store %arg6[%22, %c0_11], %21 {strides = array<i32>} : memref<8x128xf32, #tpu.memory_space<vmem>>, vector<1x128xf32>,
    %c2_i32 = arith.constant 2 : i32
    %c0_12 = arith.constant 0 : index
    %24 = arith.index_cast %c2_i32 : i32 to index
    %c0_13 = arith.constant 0 : index
    %25 = vector.load %arg2[%c0_12, %24, %c0_13] : memref<1x8x128xf32, #tpu.memory_space<vmem>>, vector<1x1x128xf32>
    %26 = vector.shape_cast %25 : vector<1x1x128xf32> to vector<1x128xf32>
    %cst_14 = arith.constant 3.000000e-01 : f32
    %27 = vector.broadcast %cst_14 : f32 to vector<1x128xf32>
    %28 = arith.mulf %27, %26 : vector<1x128xf32>
    %cst_15 = arith.constant 0.699999988 : f32
    %29 = vector.broadcast %cst_15 : f32 to vector<1x128xf32>
    %30 = arith.mulf %29, %21 : vector<1x128xf32>
    %31 = arith.addf %28, %30 : vector<1x128xf32>
    %32 = arith.index_cast %c2_i32 : i32 to index
    %c0_16 = arith.constant 0 : index
    %33 = vector.load %arg6[%32, %c0_16] : memref<8x128xf32, #tpu.memory_space<vmem>>, vector<1x128xf32>
    tpu.vector_store %arg6[%32, %c0_16], %31 {strides = array<i32>} : memref<8x128xf32, #tpu.memory_space<vmem>>, vector<1x128xf32>,
    %c3_i32 = arith.constant 3 : i32
    %c0_17 = arith.constant 0 : index
    %34 = arith.index_cast %c3_i32 : i32 to index
    %c0_18 = arith.constant 0 : index
    %35 = vector.load %arg2[%c0_17, %34, %c0_18] : memref<1x8x128xf32, #tpu.memory_space<vmem>>, vector<1x1x128xf32>
    %36 = vector.shape_cast %35 : vector<1x1x128xf32> to vector<1x128xf32>
    %cst_19 = arith.constant 3.000000e-01 : f32
    %37 = vector.broadcast %cst_19 : f32 to vector<1x128xf32>
    %38 = arith.mulf %37, %36 : vector<1x128xf32>
    %cst_20 = arith.constant 0.699999988 : f32
    %39 = vector.broadcast %cst_20 : f32 to vector<1x128xf32>
    %40 = arith.mulf %39, %31 : vector<1x128xf32>
    %41 = arith.addf %38, %40 : vector<1x128xf32>
    %42 = arith.index_cast %c3_i32 : i32 to index
    %c0_21 = arith.constant 0 : index
    %43 = vector.load %arg6[%42, %c0_21] : memref<8x128xf32, #tpu.memory_space<vmem>>, vector<1x128xf32>
    tpu.vector_store %arg6[%42, %c0_21], %41 {strides = array<i32>} : memref<8x128xf32, #tpu.memory_space<vmem>>, vector<1x128xf32>,
    %c4_i32 = arith.constant 4 : i32
    %c0_22 = arith.constant 0 : index
    %44 = arith.index_cast %c4_i32 : i32 to index
    %c0_23 = arith.constant 0 : index
    %45 = vector.load %arg2[%c0_22, %44, %c0_23] : memref<1x8x128xf32, #tpu.memory_space<vmem>>, vector<1x1x128xf32>
    %46 = vector.shape_cast %45 : vector<1x1x128xf32> to vector<1x128xf32>
    %cst_24 = arith.constant 3.000000e-01 : f32
    %47 = vector.broadcast %cst_24 : f32 to vector<1x128xf32>
    %48 = arith.mulf %47, %46 : vector<1x128xf32>
    %cst_25 = arith.constant 0.699999988 : f32
    %49 = vector.broadcast %cst_25 : f32 to vector<1x128xf32>
    %50 = arith.mulf %49, %41 : vector<1x128xf32>
    %51 = arith.addf %48, %50 : vector<1x128xf32>
    %52 = arith.index_cast %c4_i32 : i32 to index
    %c0_26 = arith.constant 0 : index
    %53 = vector.load %arg6[%52, %c0_26] : memref<8x128xf32, #tpu.memory_space<vmem>>, vector<1x128xf32>
    tpu.vector_store %arg6[%52, %c0_26], %51 {strides = array<i32>} : memref<8x128xf32, #tpu.memory_space<vmem>>, vector<1x128xf32>,
    %c5_i32 = arith.constant 5 : i32
    %c0_27 = arith.constant 0 : index
    %54 = arith.index_cast %c5_i32 : i32 to index
    %c0_28 = arith.constant 0 : index
    %55 = vector.load %arg2[%c0_27, %54, %c0_28] : memref<1x8x128xf32, #tpu.memory_space<vmem>>, vector<1x1x128xf32>
    %56 = vector.shape_cast %55 : vector<1x1x128xf32> to vector<1x128xf32>
    %cst_29 = arith.constant 3.000000e-01 : f32
    %57 = vector.broadcast %cst_29 : f32 to vector<1x128xf32>
    %58 = arith.mulf %57, %56 : vector<1x128xf32>
    %cst_30 = arith.constant 0.699999988 : f32
    %59 = vector.broadcast %cst_30 : f32 to vector<1x128xf32>
    %60 = arith.mulf %59, %51 : vector<1x128xf32>
    %61 = arith.addf %58, %60 : vector<1x128xf32>
    %62 = arith.index_cast %c5_i32 : i32 to index
    %c0_31 = arith.constant 0 : index
    %63 = vector.load %arg6[%62, %c0_31] : memref<8x128xf32, #tpu.memory_space<vmem>>, vector<1x128xf32>
    tpu.vector_store %arg6[%62, %c0_31], %61 {strides = array<i32>} : memref<8x128xf32, #tpu.memory_space<vmem>>, vector<1x128xf32>,
    %c6_i32 = arith.constant 6 : i32
    %c0_32 = arith.constant 0 : index
    %64 = arith.index_cast %c6_i32 : i32 to index
    %c0_33 = arith.constant 0 : index
    %65 = vector.load %arg2[%c0_32, %64, %c0_33] : memref<1x8x128xf32, #tpu.memory_space<vmem>>, vector<1x1x128xf32>
    %66 = vector.shape_cast %65 : vector<1x1x128xf32> to vector<1x128xf32>
    %cst_34 = arith.constant 3.000000e-01 : f32
    %67 = vector.broadcast %cst_34 : f32 to vector<1x128xf32>
    %68 = arith.mulf %67, %66 : vector<1x128xf32>
    %cst_35 = arith.constant 0.699999988 : f32
    %69 = vector.broadcast %cst_35 : f32 to vector<1x128xf32>
    %70 = arith.mulf %69, %61 : vector<1x128xf32>
    %71 = arith.addf %68, %70 : vector<1x128xf32>
    %72 = arith.index_cast %c6_i32 : i32 to index
    %c0_36 = arith.constant 0 : index
    %73 = vector.load %arg6[%72, %c0_36] : memref<8x128xf32, #tpu.memory_space<vmem>>, vector<1x128xf32>
    tpu.vector_store %arg6[%72, %c0_36], %71 {strides = array<i32>} : memref<8x128xf32, #tpu.memory_space<vmem>>, vector<1x128xf32>,
    %c7_i32 = arith.constant 7 : i32
    %c0_37 = arith.constant 0 : index
    %74 = arith.index_cast %c7_i32 : i32 to index
    %c0_38 = arith.constant 0 : index
    %75 = vector.load %arg2[%c0_37, %74, %c0_38] : memref<1x8x128xf32, #tpu.memory_space<vmem>>, vector<1x1x128xf32>
    %76 = vector.shape_cast %75 : vector<1x1x128xf32> to vector<1x128xf32>
    %cst_39 = arith.constant 3.000000e-01 : f32
    %77 = vector.broadcast %cst_39 : f32 to vector<1x128xf32>
    %78 = arith.mulf %77, %76 : vector<1x128xf32>
    %cst_40 = arith.constant 0.699999988 : f32
    %79 = vector.broadcast %cst_40 : f32 to vector<1x128xf32>
    %80 = arith.mulf %79, %71 : vector<1x128xf32>
    %81 = arith.addf %78, %80 : vector<1x128xf32>
    %82 = arith.index_cast %c7_i32 : i32 to index
    %c0_41 = arith.constant 0 : index
    %83 = vector.load %arg6[%82, %c0_41] : memref<8x128xf32, #tpu.memory_space<vmem>>, vector<1x128xf32>
    tpu.vector_store %arg6[%82, %c0_41], %81 {strides = array<i32>} : memref<8x128xf32, #tpu.memory_space<vmem>>, vector<1x128xf32>,
    %c8_i32 = arith.constant 8 : i32
    %c0_42 = arith.constant 0 : index
    %c0_43 = arith.constant 0 : index
    %84 = vector.load %arg5[%c0_42, %c0_43] : memref<1x128xf32, #tpu.memory_space<vmem>>, vector<1x128xf32>
    tpu.vector_store %arg5[%c0_42, %c0_43], %81 {strides = array<i32>} : memref<1x128xf32, #tpu.memory_space<vmem>>, vector<1x128xf32>,
    %c0_44 = arith.constant 0 : index
    %c0_45 = arith.constant 0 : index
    %c0_46 = arith.constant 0 : index
    %85 = vector.load %arg2[%c0_44, %c0_45, %c0_46] : memref<1x8x128xf32, #tpu.memory_space<vmem>>, vector<1x8x128xf32>
    %86 = vector.shape_cast %85 : vector<1x8x128xf32> to vector<8x128xf32>
    %c0_47 = arith.constant 0 : index
    %c0_48 = arith.constant 0 : index
    %87 = vector.load %arg6[%c0_47, %c0_48] : memref<8x128xf32, #tpu.memory_space<vmem>>, vector<8x128xf32>
    %88 = math.log %86 : vector<8x128xf32>
    %89 = math.log %87 : vector<8x128xf32>
    %90 = arith.subf %88, %89 : vector<8x128xf32>
    %cst_49 = arith.constant 2.000000e+01 : f32
    %91 = vector.broadcast %cst_49 : f32 to vector<8x128xf32>
    %92 = arith.mulf %90, %91 : vector<8x128xf32>
    %cst_50 = arith.constant 0.00999999977 : f32
    %93 = vector.broadcast %cst_50 : f32 to vector<8x128xf32>
    %94 = arith.subf %92, %93 : vector<8x128xf32>
    %cst_51 = arith.constant 0.000000e+00 : f32
    %95 = vector.broadcast %cst_51 : f32 to vector<8x128xf32>
    %96 = arith.maximumf %94, %95 : vector<8x128xf32>
    %c0_52 = arith.constant 0 : index
    %c0_53 = arith.constant 0 : index
    %c0_54 = arith.constant 0 : index
    %97 = vector.load %arg4[%c0_52, %c0_53, %c0_54] : memref<1x8x256xf32, #tpu.memory_space<vmem>>, vector<1x8x128xf32>
    %98 = vector.shape_cast %97 : vector<1x8x128xf32> to vector<8x128xf32>
    %99 = vector.shape_cast %96 : vector<8x128xf32> to vector<1x8x128xf32>
    tpu.vector_store %arg4[%c0_52, %c0_53, %c0_54], %99 {strides = array<i32>} : memref<1x8x256xf32, #tpu.memory_space<vmem>>, vector<1x8x128xf32>,
    %cst_55 = arith.constant 0.000000e+00 : f32
    %100 = vector.broadcast %cst_55 : f32 to vector<8x128xf32>
    %101 = arith.subf %100, %92 : vector<8x128xf32>
    %cst_56 = arith.constant 0.00999999977 : f32
    %102 = vector.broadcast %cst_56 : f32 to vector<8x128xf32>
    %103 = arith.subf %101, %102 : vector<8x128xf32>
    %cst_57 = arith.constant 0.000000e+00 : f32
    %104 = vector.broadcast %cst_57 : f32 to vector<8x128xf32>
    %105 = arith.maximumf %103, %104 : vector<8x128xf32>
    %c0_58 = arith.constant 0 : index
    %c0_59 = arith.constant 0 : index
    %c128 = arith.constant 128 : index
    %106 = vector.load %arg4[%c0_58, %c0_59, %c128] : memref<1x8x256xf32, #tpu.memory_space<vmem>>, vector<1x8x128xf32>
    %107 = vector.shape_cast %106 : vector<1x8x128xf32> to vector<8x128xf32>
    %108 = vector.shape_cast %105 : vector<8x128xf32> to vector<1x8x128xf32>
    tpu.vector_store %arg4[%c0_58, %c0_59, %c128], %108 {strides = array<i32>} : memref<1x8x256xf32, #tpu.memory_space<vmem>>, vector<1x8x128xf32>,
    return
  }
  func.func @transform_0(%arg0: i32, %arg1: i32) -> (i32, i32, i32) {
    %c0_i32 = arith.constant 0 : i32
    %c0_i32_0 = arith.constant 0 : i32
    return %arg0, %arg1, %c0_i32 : i32, i32, i32
  }
  func.func @transform_1(%arg0: i32, %arg1: i32) -> (i32, i32, i32) {
    %c0_i32 = arith.constant 0 : i32
    %c0_i32_0 = arith.constant 0 : i32
    %c0_i32_1 = arith.constant 0 : i32
    return %arg0, %c0_i32, %c0_i32_0 : i32, i32, i32
  }
  func.func @transform_2(%arg0: i32, %arg1: i32) -> (i32, i32, i32) {
    %c0_i32 = arith.constant 0 : i32
    %c0_i32_0 = arith.constant 0 : i32
    return %arg0, %arg1, %c0_i32 : i32, i32, i32
  }
}

</mosaic_0001>

<bundles_post_ra>
// kernel: tpu_custom_call.1
= control target key start
LH: loop header
LB: loop body
LE: loop exit
PB: predicated region body
PF: predicated region fallthrough
CT: control target
= control target key end

     0   :  { %7 = vsyncpa [#allocation5], 0  ;;  %s831_s0 = inlined_call_operand.hbm [shape: f32[2,32,128], index: 0, kind: input, shape index: {}]   ;;  %s832_s1 = inlined_call_operand.vmem [shape: f32[2,1,128], index: 1, kind: input, shape index: {}]   ;;  %s833_s2 = inlined_call_operand.hbm [shape: f32[2,32,256], index: 2, kind: output, shape index: {}]  }
   0x1   :  { %9 = vsyncpa [#allocation5 + $0x1], 0 }
   0x2   :  { %10 = vsyncpa [#allocation6], 0 }
   0x3   :  { %12 = vsyncpa [#allocation6 + $0x1], 0  ;;  %s614_s9 = smov 0   ;;  %s616_s10 = smov 0  }
   0x4   :  { %s618_s11 = smov 0   ;;  %s620_s12 = smov 0  }
   0x5   :  { %s622_s13 = smov 0   ;;  %s624_s14 = smov 0  }
   0x6   :  { %s626_s15 = smov 0   ;;  %s628_s16 = smov 0  }
   0x7 LB: > { %s366_s17 = sadd.s32 4294967295, %s595_s16   ;;  %s367_s18 = sadd.s32 4294967294, %s595_s16   ;;  %s595_s16 = sphi %s628_s16, %s18_s16   ;;  %s591_s15 = sphi %s626_s15, %s850_s15   ;;  %s587_s14 = sphi %s624_s14, %s849_s14   ;;  %s583_s13 = sphi %s622_s13, %s848_s13   ;;  %s579_s12 = sphi %s620_s12, %s847_s12   ;;  %s575_s11 = sphi %s618_s11, %s846_s11   ;;  %s571_s10 = sphi %s616_s10, %s845_s10   ;;  %s567_s9 = sphi %s614_s9, %s844_s9  }
   0x8   : > { %s27_s19 = sadd.s32 1, %s587_s14  ;;  %s30_s20 = sadd.s32 1, %s591_s15 }
   0x9   : > { %p28_p0 = scmp.ge.s32.totalorder %s27_s19, 4  ;;  %s39_s21 = sadd.s32 1, %s575_s11 }
   0xa   : > { %p46_p1 = scmp.ne.s32.totalorder %s575_s11, %s571_s10  ;;  %p47_p2 = scmp.eq.s32.totalorder %s595_s16, 0 }
   0xb   : > { %s852_s19 = smov (%p28_p0, %s27_s19), 0  ;;  %s854_s20 = smov (!%p28_p0, %s30_s20), %s591_s15 }
   0xc   : > { %s35_s22 = ssub.s32 %s587_s14, %s852_s19  ;;  %p667_p3 = por %p47_p2, %p46_p1 }
   0xd   : > { %p32_p4 = scmp.ge.s32.totalorder %s854_s20, 2  ;;  %p52_p5 = scmp.ne.s32.totalorder %s571_s10, %s567_s9 }
   0xe   : > { %p53_p6 = scmp.eq.s32.totalorder %s366_s17, 0  ;;  %p104_p7 = scmp.eq.s32.totalorder %s366_s17, 7 }
   0xf   : > { %s856_s20 = smov (%p32_p4, %s854_s20), 0  ;;  %p110_p10 = scmp.eq.s32.totalorder %s367_s18, 7 }
  0x10   : > { %p675_p8 = por %p53_p6, %p52_p5  ;;  %p679_p9 = por %p104_p7, %p46_p1 }
  0x11   : > { %s34_s26 = ssub.s32 %s591_s15, %s856_s20  ;;  %p685_p12 = por %p110_p10, %p52_p5 }
  0x12   : > { %s837_s25 = scalar_select %p679_p9, 1, 0 }
  0x13   : > { %s36_s27 = sor.u32 %s35_s22, %s34_s26  ;;  %p397_p13 = scmp.lt.s32.totalorder %s595_s16, 8 }
  0x14   : > { %p37_p11 = scmp.eq.s32.totalorder %s36_s27, 0  ;;  %s130_s29 = sand.u32 1, %s575_s11  }
  0x15   : > { %s838_s28 = scalar_select %p685_p12, 1, 0 }
  0x16   : > { %s692_s30 = scalar_select %p37_p11, %s575_s11, %s39_s21  }
  0x17   : > { %s370_s3 = sshll.u32 %s130_s29, 3  ;;  %s371_s4 = sshll.u32 %s591_s15, 2 }
  0x18   : > { %s139_s5 = sadd.s32 %s587_s14, %s371_s4  ;;  %s134_s6 = scalar_lea.vmem [#allocation4], %s370_s3 }
  0x19   : > { %s143_s7 = sshll.u32 %s134_s6, 4  ;;  %s372_s8 = sshll.u32 %s139_s5, 7  ;;  %s696_s7 = int_to_ptr.vmem [resolvable:$true] %s143_s7 }
  0x1a   : > { %s701_s22 = scalar_lea.hbm %s831_s0, %s372_s8  ;;  %p705_p0 = pnand %p397_p13, %p667_p3 }
  0x1b   : > { %s131_s26 = scalar_lea.sflag [#allocation5], %s130_s29  ;;  %s467_s27 = scalar_lea.hbm %s701_s22, 128 }
  0x1c   : > { %p468_p4 = scmp.ne.s32.totalorder %s701_s22, %s467_s27  ;;  %p469_p5 = pneg %p705_p0 }
  0x1d   : > { %s472_s4 = scalar_lea.hbm %s831_s0, 1024  ;;  %p473_p3 = scmp.lt.u32.totalorder %s701_s22, %s831_s0 }
  0x1e   : > { %p470_p6 = pnand %p469_p5, %p468_p4  ;;  %p474_p10 = scmp.lt.u32.totalorder %s472_s4, %s467_s27 }
  0x1f   : > { %p476_p13 = scmp.lt.u32.totalorder %s467_s27, %s701_s22 }
  0x20   : > { %p471_p7 = pneg %p470_p6  ;;  %p475_p11 = por %p474_p10, %p473_p3 }
  0x22   : > { %p477_p1 = por %p476_p13, %p475_p11 }
  0x24   : > { %p478_p2 = pnand %p477_p1, %p471_p7 }
  0x26   : > { %481 = shalt.err (!%p478_p2)
}
  0x27   : > { %s482_s29 = scalar_lea.vmem %s696_s7, 128  ;;  %s597_s8 = smov [#allocation4]  }
  0x28   : > { %p483_p4 = scmp.ne.s32.totalorder %s696_s7, %s482_s29  ;;  %s487_s17 = sshll.u32 %s597_s8, 4  ;;  %s488_s17 = int_to_ptr.vmem [resolvable:$false] %s487_s17 }
  0x29   : > { %s489_s18 = scalar_lea.vmem %s488_s17, 256  ;;  %p490_p9 = scmp.lt.s32.totalorder %s696_s7, %s488_s17 }
  0x2a   : > { %p485_p6 = pnand %p483_p4, %p469_p5  ;;  %p491_p3 = scmp.lt.s32.totalorder %s489_s18, %s482_s29 }
  0x2c   : > { %p486_p12 = pneg %p485_p6  ;;  %p492_p10 = por %p491_p3, %p490_p9 }
  0x2e   : > { %p493_p11 = pnand %p492_p10, %p486_p12 }
  0x30   : > { %496 = shalt.err (!%p493_p11)
}
  0x31   : > { %392 = dma.hbm_to_vmem [thread:$0]  (!%p705_p0), %s701_s22, 128, %s696_s7, %s131_s26  }
  0x32   : > { %p840_p1 = scmp.lt.s32.totalorder %s595_s16, 9  ;;  %p841_p2 = scmp.ge.s32.totalorder %s595_s16, 1 }
  0x34   : > { %p155_p5 = pnand %p841_p2, %p840_p1 }
  0x35   : > { %s741_s27 = sand.u32 (!%p155_p5), 1, %s571_s10  }
  0x36   : > { %158 = sbr.rel (%p155_p5) target bundleno = 153 (0x99), region = 28  ;;  %s374_s23 = sshll.u32 (!%p155_p5), %s741_s27, 3 }
  0x37   : > { %s161_s3 = scalar_lea.sflag (!%p155_p5), [#allocation5], %s741_s27  ;;  %s745_s4 = scalar_lea.vmem (!%p155_p5), [#allocation4], %s374_s23 }
  0x3d   : > { %558 = dma.done.wait (%p675_p8), %s161_s3, 128  }
  0x3e   : > { %560 = vsyncadd (%p675_p8), %s161_s3, 4294967168  ;;  %s375_s7 = sshll.u32 %s741_s27, 4  ;;  %p188_p9 = scmp.lt.s32.totalorder %s583_s13, 1 }
  0x3f   : > { %s757_s6 = scalar_lea.vmem [#allocation7], %s375_s7  ;;  %p376_p12 = scmp.ne.s32.totalorder %s579_s12, 0 }
  0x40   : > { %s189_s22 = scalar_select %p188_p9, %s583_s13, 1 }
  0x41   : > { %194 = sbr.rel (%p376_p12) target bundleno = 72 (0x48), region = 36 }
  0x42   : > { %s190_s5 = scalar_lea.vmem %s832_s1, %s189_s22 }
  0x43   : > { %v195_v0 = vld [vmem:[%s190_s5] sm:$0x1] (!%p376_p12) }
  0x44   : > { %196 = vst [vmem:[#allocation2] sm:$0x1] (!%p376_p12), %v195_v0 }
  0x48 PF: > { %v198_v2 = vld [vmem:[%s745_s4] sm:$0x1]  ;;  %v203_v3 = vld [vmem:[%s745_s4 + $0x1] sm:$0x1]  ;;  %v208_v8 = vld [vmem:[%s745_s4 + $0x2] sm:$0x1] }
  0x49   : > { %v199_v4 = vmul.f32 0.3, %v198_v2  ;;  %v204_v7 = vmul.f32 0.3, %v203_v3  ;;  %v209_v11 = vmul.f32 0.3, %v208_v8 }
  0x4a   : > { %v213_v12 = vld [vmem:[%s745_s4 + $0x3] sm:$0x1]  ;;  %v218_v16 = vld [vmem:[%s745_s4 + $0x4] sm:$0x1]  ;;  %v223_v20 = vld [vmem:[%s745_s4 + $0x5] sm:$0x1] }
  0x4b   : > { %v197_v1 = vld [vmem:[#allocation2] sm:$0x1]  ;;  %v214_v15 = vmul.f32 0.3, %v213_v12  ;;  %v219_v19 = vmul.f32 0.3, %v218_v16 }
  0x4c   : > { %v200_v5 = vmul.f32 0.7, %v197_v1  ;;  %v224_v23 = vmul.f32 0.3, %v223_v20  ;;  %v228_v24 = vld [vmem:[%s745_s4 + $0x6] sm:$0x1] }
  0x4d   : > { %v229_v27 = vmul.f32 0.3, %v228_v24  ;;  %v233_v28 = vld [vmem:[%s745_s4 + $0x7] sm:$0x1]  ;;  %s380_s24 = sshll.u32 %s579_s12, 1  ;;  %s381_s29 = sshll.u32 %s583_s13, 3 }
  0x4e   : > { %v201_v6 = vadd.f32 %v200_v5, %v199_v4  ;;  %v234_v31 = vmul.f32 0.3, %v233_v28  ;;  %v239_v34 = vld [vmem:[%s745_s4] sm:$0xff]  ;;  %s267_s8 = sadd.s32 %s381_s29, %s380_s24  ;;  %s271_s18 = sshll.u32 %s757_s6, 4  ;;  %s778_s18 = int_to_ptr.vmem [resolvable:$true] %s271_s18 }
  0x4f   : > { %463 = vlog2.f32 %v239_v34  ;;  %s382_s17 = sshll.u32 %s267_s8, 7  ;;  %s255_s12 = scalar_lea.sflag [#allocation6], %s741_s27 }
  0x50   : > { %202 = vst [vmem:[#allocation3] sm:$0x1] %v201_v6  ;;  %v205_v9 = vmul.f32 0.7, %v201_v6  ;;  %s776_s4 = scalar_lea.hbm %s833_s2, %s382_s17  ;;  %s497_s13 = scalar_lea.vmem %s778_s18, 256 }
  0x51   : > { %p498_p8 = scmp.ne.s32.totalorder %s778_s18, %s497_s13  ;;  %p842_p0 = scmp.ne.s32.totalorder %s837_s25, 0 }
  0x52   : > { %v206_v10 = vadd.f32 %v205_v9, %v204_v7  ;;  %s598_s7 = smov [#allocation7]  }
  0x53   : > { %p499_p7 = pnand %p498_p8, %p842_p0  ;;  %s501_s22 = sshll.u32 %s598_s7, 4  ;;  %s502_s22 = int_to_ptr.vmem [resolvable:$false] %s501_s22 }
  0x54   : > { %207 = vst [vmem:[#allocation3 + $0x1] sm:$0x1] %v206_v10  ;;  %v210_v13 = vmul.f32 0.7, %v206_v10  ;;  %s503_s21 = scalar_lea.vmem %s502_s22, 512  ;;  %p504_p4 = scmp.lt.s32.totalorder %s778_s18, %s502_s22 }
  0x55   : > { %p500_p13 = pneg %p499_p7  ;;  %p505_p6 = scmp.lt.s32.totalorder %s503_s21, %s497_s13 }
  0x56   : > { %v211_v14 = vadd.f32 %v210_v13, %v209_v11 }
  0x57   : > { %p506_p3 = por %p505_p6, %p504_p4 }
  0x58   : > { %212 = vst [vmem:[#allocation3 + $0x2] sm:$0x1] %v211_v14  ;;  %v215_v17 = vmul.f32 0.7, %v211_v14 }
  0x59   : > { %v464_v36 = vpop.eup %463  ;;  %p507_p10 = pnand %p506_p3, %p500_p13 }
  0x5a   : > { %v216_v18 = vadd.f32 %v215_v17, %v214_v15  ;;  %v242_v37 = vmul.f32 0.6931472, %v464_v36 }
  0x5c   : > { %217 = vst [vmem:[#allocation3 + $0x3] sm:$0x1] %v216_v18  ;;  %v220_v21 = vmul.f32 0.7, %v216_v18 }
  0x5e   : > { %v221_v22 = vadd.f32 %v220_v21, %v219_v19 }
  0x60   : > { %222 = vst [vmem:[#allocation3 + $0x4] sm:$0x1] %v221_v22  ;;  %v225_v25 = vmul.f32 0.7, %v221_v22 }
  0x62   : > { %v226_v26 = vadd.f32 %v225_v25, %v224_v23 }
  0x64   : > { %227 = vst [vmem:[#allocation3 + $0x5] sm:$0x1] %v226_v26  ;;  %v230_v29 = vmul.f32 0.7, %v226_v26 }
  0x66   : > { %v231_v30 = vadd.f32 %v230_v29, %v229_v27 }
  0x68   : > { %232 = vst [vmem:[#allocation3 + $0x6] sm:$0x1] %v231_v30  ;;  %v235_v32 = vmul.f32 0.7, %v231_v30 }
  0x6a   : > { %v236_v33 = vadd.f32 %v235_v32, %v234_v31 }
  0x6c   : > { %237 = vst [vmem:[#allocation3 + $0x7] sm:$0x1] %v236_v33  ;;  %238 = vst [vmem:[#allocation2] sm:$0x1] %v236_v33 }
  0x73   : > { %v240_v35 = vld [vmem:[#allocation3] sm:$0xff] }
  0x74   : > { %465 = vlog2.f32 %v240_v35 }
  0x7e   : > { %v466_v38 = vpop.eup %465 }
  0x7f   : > { %v244_v39 = vmul.f32 0.6931472, %v466_v38 }
  0x81   : > { %v245_v40 = vsub.f32 %v242_v37, %v244_v39 }
  0x83   : > { %v246_v41 = vmul.f32 20.0, %v245_v40 }
  0x85   : > { %v377_v42 = vadd.f32 -0.01, %v246_v41  ;;  %v250_v43 = vsub.f32 0.0, %v246_v41 }
  0x87   : > { %v248_v44 = vmax.f32 %v377_v42, 0.0  ;;  %v378_v45 = vadd.f32 -0.01, %v250_v43 }
  0x89   : > { %249 = vst [vmem:[%s757_s6] sm:$0xff] %v248_v44  ;;  %v252_v46 = vmax.f32 %v378_v45, 0.0 }
  0x8b   : > { %253 = vst [vmem:[%s757_s6 + $0x8] sm:$0xff] %v252_v46 }
  0x8c   : > { %510 = shalt.err (!%p507_p10)
}
  0x8d   : > { %s511_s27 = scalar_lea.hbm %s776_s4, 256  ;;  %s515_s6 = scalar_lea.hbm %s833_s2, 2048 }
  0x8e   : > { %p512_p11 = scmp.ne.s32.totalorder %s776_s4, %s511_s27  ;;  %p516_p5 = scmp.lt.u32.totalorder %s776_s4, %s833_s2 }
  0x8f   : > { %p517_p9 = scmp.lt.u32.totalorder %s515_s6, %s511_s27  ;;  %p519_p8 = scmp.lt.u32.totalorder %s511_s27, %s776_s4 }
  0x90   : > { %p513_p1 = pnand %p512_p11, %p842_p0 }
  0x91   : > { %p518_p12 = por %p517_p9, %p516_p5 }
  0x92   : > { %p514_p2 = pneg %p513_p1 }
  0x93   : > { %p520_p7 = por %p519_p8, %p518_p12 }
  0x95   : > { %p521_p13 = pnand %p520_p7, %p514_p2 }
  0x97   : > { %524 = shalt.err (!%p521_p13)
}
  0x98   : > { %387 = dma.vmem_to_hbm [thread:$0]  (%p842_p0), %s778_s18, 256, %s776_s4, %s255_s12  }
  0x99 PF: > { %p398_p4 = scmp.ge.s32.totalorder %s595_s16, 2  ;;  %s283_s8 = sand.u32 1, %s567_s9  }
  0x9a   : > { %p843_p6 = scmp.ne.s32.totalorder %s838_s28, 0  ;;  %s284_s17 = scalar_lea.sflag [#allocation6], %s283_s8 }
  0x9c   : > { %p394_p3 = pnand %p398_p4, %p843_p6 }
  0x9e   : > { %562 = dma.done.wait (!%p394_p3), %s284_s17, 256  }
  0x9f   : > { %564 = vsyncadd (!%p394_p3), %s284_s17, 4294967040  ;;  %s18_s16 = sadd.s32 1, %s595_s16   ;;  %s844_s9 = smov %s571_s10 }
  0xa0   : > { %p15_p10 = scmp.ge.s32.totalorder %s18_s16, 10   ;;  %s845_s10 = smov %s575_s11 }
  0xa1   : > { %s846_s11 = smov %s692_s30  ;;  %s847_s12 = smov %s587_s14 }
  0xa2   : > { %s848_s13 = smov %s591_s15  ;;  %s849_s14 = smov %s852_s19 }
  0xa3   : > { %s850_s15 = smov %s856_s20  ;;  %17 = sbr.rel (!%p15_p10) target bundleno = 7 (0x7), region = 80 }
  0xaa   :  { %289 = vsyncpa [#allocation5], 1 }
  0xab   :  { %291 = vsyncpa [#allocation5 + $0x1], 1 }
  0xac   :  { %292 = vsyncpa [#allocation6], 1 }
  0xad   :  { %294 = vsyncpa [#allocation6 + $0x1], 1 }

</bundles_post_ra>
